<compile_context>
chip_gen: v5e
topology: v5e:2x2
jax: 0.10.0
libtpu: 0.0.40
codegen_flags: <defaults>
</compile_context>

<pallas_src>
import functools

import jax
import jax.numpy as jnp
from jax.experimental import pallas as pl
from jax.experimental.pallas import tpu as pltpu

_LANE = 128      # vreg lane width (last dim)
_SUBLANE = 8     # vreg sublane count (second-to-last dim)


def _round_up(x, m):
    return ((x + m - 1) // m) * m


# ---------------------------------------------------------------------------
# Kernel
# ---------------------------------------------------------------------------
def _autoencoder_kernel(x_ref,
                        w1_ref, b1_ref,
                        w2_ref, b2_ref,
                        w3_ref, b3_ref,
                        w4_ref, b4_ref,
                        out_ref):
    """Full forward pass on one batch tile.

    x_ref:  (tile_b, F)  f32   (natural width, cast to bf16 in-kernel)
    w1:     (F, E0p)     bf16  w2: (E0p, E1p)  w3: (E1p, E0p)  w4: (E0p, F)
    b1..b3: (1, Exp)     f32   b4: (1, F) f32
    out:    (tile_b, F)  f32
    Hidden dims E0p/E1p are zero-padded to 128 lanes; tanh(0)=0 and zero weight rows/cols
    keep the padding lanes exactly zero, so results are unchanged.
    Dropout layers are identity (eval mode).
    """
    cdt = w1_ref.dtype  # compute dtype for MXU operands + hidden tanh (bf16)

    def hidden_layer(h, w_ref, b_ref):
        acc = jnp.dot(h, w_ref[...], preferred_element_type=jnp.float32)
        # bias-add + tanh in bf16: halves EUP work (v6e/v7x); result feeds next matmul in
        # bf16 anyway so there is no extra rounding step.
        return jnp.tanh((acc + b_ref[...]).astype(cdt))

    h = x_ref[...].astype(cdt)
    h = hidden_layer(h, w1_ref, b1_ref)     # encoder fc1 -> tanh  (-> dropout: identity)
    h = hidden_layer(h, w2_ref, b2_ref)     # encoder fc2 -> tanh  (-> dropout: identity)
    h = hidden_layer(h, w3_ref, b3_ref)     # decoder fc3 -> tanh
    acc = jnp.dot(h, w4_ref[...], preferred_element_type=jnp.float32)
    out_ref[...] = jnp.tanh(acc + b4_ref[...]).astype(out_ref.dtype)   # final tanh in f32


# ---------------------------------------------------------------------------
# Tile selection
# ---------------------------------------------------------------------------
def _pick_tile_b(batch, min_steps=4, cap=2048):
    """Pick the batch tile.

    Targets >= min_steps grid steps (>= 2 per TensorCore on v7x) so the parallel axis can
    shard across cores and input/output DMA pipelines with compute.  Tiles are rounded to
    MXU-friendly multiples (256 when large, 8 sublanes otherwise) and capped for VMEM
    (2048 x 128 f32 intermediates + double-buffered I/O stay a few MiB).
    """
    if batch < _SUBLANE:
        return int(batch)                          # single block == full dim (legal)
    if batch <= min_steps * _SUBLANE:
        return _SUBLANE
    tb = -(-batch // min_steps)                    # cdiv
    granule = 256 if tb >= 256 else _SUBLANE
    tb = max((tb // granule) * granule, granule)   # round DOWN: keeps >= min_steps
    return int(min(tb, cap))


def _sanitize_tile_b(batch, tile_b):
    tile_b = int(tile_b)
    if tile_b >= batch:
        return int(batch)                          # full-dim block, always legal
    tile_b = max(_SUBLANE, (tile_b // _SUBLANE) * _SUBLANE)
    return min(tile_b, int(batch))


# ---------------------------------------------------------------------------
# Wrapper
# ---------------------------------------------------------------------------
@functools.partial(jax.jit, static_argnames=("tile_b",))
def _forward_impl(x, kparams, tile_b):
    B, F = x.shape
    w1, b1 = kparams["w1"], kparams["b1"]
    w2, b2 = kparams["w2"], kparams["b2"]
    w3, b3 = kparams["w3"], kparams["b3"]
    w4, b4 = kparams["w4"], kparams["b4"]

    grid = (pl.cdiv(B, tile_b),)
    full = lambda a: pl.BlockSpec(a.shape, lambda i: (0,) * a.ndim)   # resident operand

    out = pl.pallas_call(
        _autoencoder_kernel,
        out_shape=jax.ShapeDtypeStruct((B, F), jnp.float32),
        grid_spec=pltpu.PrefetchScalarGridSpec(
            num_scalar_prefetch=0,
            grid=grid,
            in_specs=[
                pl.BlockSpec((tile_b, F), lambda i: (i, 0)),   # streamed x tiles (natural F)
                full(w1), full(b1),
                full(w2), full(b2),
                full(w3), full(b3),
                full(w4), full(b4),
            ],
            out_specs=pl.BlockSpec((tile_b, F), lambda i: (i, 0)),
        ),
        compiler_params=pltpu.CompilerParams(
            dimension_semantics=("parallel",),       # batch tiles shard across TCs (v7x)
            vmem_limit_bytes=32 * 1024 * 1024,
        ),
    )(x, w1, b1, w2, b2, w3, b3, w4, b4)
    return out


def autoencoder_forward(x, kparams, *, tile_b=None):
    """x: [B, input_features] float32. kparams: output of prepare_kernel_params."""
    B, _ = x.shape
    if tile_b is None:
        tile_b = _pick_tile_b(B)
    else:
        tile_b = _sanitize_tile_b(B, tile_b)
    return _forward_impl(x, kparams, int(tile_b))


# ---------------------------------------------------------------------------
# Parameter handling
# ---------------------------------------------------------------------------
def init_params(key, input_features, encoding_dim, dtype=jnp.float32):
    """nn.Linear-style params: weight (out, in), bias (out,), U(-1/sqrt(fan_in), +)."""
    e0, e1 = encoding_dim
    layer_dims = [(input_features, e0), (e0, e1), (e1, e0), (e0, input_features)]
    params = {}
    keys = jax.random.split(key, 2 * len(layer_dims))
    for i, (fan_in, fan_out) in enumerate(layer_dims):
        bound = 1.0 / (fan_in ** 0.5)
        params[f"w{i + 1}"] = jax.random.uniform(
            keys[2 * i], (fan_out, fan_in), dtype, minval=-bound, maxval=bound)
        params[f"b{i + 1}"] = jax.random.uniform(
            keys[2 * i + 1], (fan_out,), dtype, minval=-bound, maxval=bound)
    return params


def prepare_kernel_params(params, compute_dtype=jnp.bfloat16):
    """Transpose weights to (in, out), zero-pad only HIDDEN feature axes to 128-lane
    multiples (layer-1 input dim stays F so x streams at natural width; layer-4 output dim
    stays F so the kernel writes an unpadded (B, F) result).  Matmul operands are cast to
    compute_dtype; biases stay f32 (bias-add accumulates in f32)."""
    kp = {}
    for i in range(1, 5):
        w = params[f"w{i}"]                # (out, in)
        b = params[f"b{i}"]                # (out,)
        fan_out, fan_in = w.shape
        ip = fan_in if i == 1 else _round_up(fan_in, _LANE)
        op = fan_out if i == 4 else _round_up(fan_out, _LANE)
        kp[f"w{i}"] = (jnp.zeros((ip, op), compute_dtype)
                       .at[:fan_in, :fan_out].set(w.T.astype(compute_dtype)))
        kp[f"b{i}"] = (jnp.zeros((1, op), jnp.float32)
                       .at[0, :fan_out].set(b.astype(jnp.float32)))
    return kp


# ---------------------------------------------------------------------------
# References
# ---------------------------------------------------------------------------
def reference_forward(x, params):
    """Pure-JAX f32 reference with nn.Linear semantics (x @ W^T + b)."""
    h = x
    for i in range(1, 5):
        h = jnp.tanh(h @ params[f"w{i}"].T + params[f"b{i}"])
    return h


def reference_forward_matched(x, kparams):
    """Pure-JAX reference mirroring the kernel's numerics
    (bf16 operands, f32 MXU accumulation, bf16 hidden tanh, f32 final tanh)."""
    cdt = kparams["w1"].dtype
    h = x.astype(cdt)
    for i in range(1, 4):
        acc = jnp.dot(h, kparams[f"w{i}"], preferred_element_type=jnp.float32)
        h = jnp.tanh((acc + kparams[f"b{i}"]).astype(cdt))
    acc = jnp.dot(h, kparams["w4"], preferred_element_type=jnp.float32)
    return jnp.tanh(acc + kparams["b4"])


# ---------------------------------------------------------------------------
# Self-test
# ---------------------------------------------------------------------------
if __name__ == "__main__":
    key = jax.random.PRNGKey(0)
    k_x, k_p = jax.random.split(key)

    batch = 200                    # deliberately not a tile multiple (exercises masked last block)
    input_features = 32
    encoding_dim = (16, 8)

    x = jax.random.normal(k_x, (batch, input_features), dtype=jnp.float32)
    params = init_params(k_p, input_features, encoding_dim)
    kparams = prepare_kernel_params(params, compute_dtype=jnp.bfloat16)

    out_default = autoencoder_forward(x, kparams)              # auto tile (48) -> 5 grid steps
    out_tiled = autoencoder_forward(x, kparams, tile_b=64)     # 4 grid steps, ragged last block
    jax.block_until_ready((out_default, out_tiled))

    ref_matched = reference_forward_matched(x, kparams)
    ref_f32 = reference_forward(x, params)

    assert out_default.shape == (batch, input_features)
    assert out_default.dtype == jnp.float32
    assert jnp.allclose(out_default, out_tiled, atol=1e-5), \
        "tile-size dependence detected"
    assert jnp.allclose(out_default, ref_matched, atol=3e-2), \
        "mismatch vs matched-numerics reference (default tile)"
    assert jnp.allclose(out_tiled, ref_matched, atol=3e-2), \
        "mismatch vs matched-numerics reference (tile_b=64)"
    assert jnp.allclose(out_default, ref_f32, atol=7.5e-2), \
        "bf16 path drifted too far from full-f32 reference"

    print("KERNEL_OK")
</pallas_src>

<mosaic_0001>
module attributes {stable_mosaic.version = 11 : i64} {
  func.func @_autoencoder_kernel(%arg0: i32, %arg1: memref<48x32xf32, #tpu.memory_space<vmem>>, %arg2: memref<32x128xbf16, #tpu.memory_space<vmem>>, %arg3: memref<1x128xf32, #tpu.memory_space<vmem>>, %arg4: memref<128x128xbf16, #tpu.memory_space<vmem>>, %arg5: memref<1x128xf32, #tpu.memory_space<vmem>>, %arg6: memref<128x128xbf16, #tpu.memory_space<vmem>>, %arg7: memref<1x128xf32, #tpu.memory_space<vmem>>, %arg8: memref<128x32xbf16, #tpu.memory_space<vmem>>, %arg9: memref<1x32xf32, #tpu.memory_space<vmem>>, %arg10: memref<48x32xf32, #tpu.memory_space<vmem>>) attributes {dimension_semantics = [#tpu.dimension_semantics<parallel>], iteration_bounds = array<i64: 5>, scalar_prefetch = 0 : i64, scratch_operands = 0 : i64, tpu.core_type = #tpu.core_type<tc>, window_params = [{transform_indices = @transform_0, window_bounds = array<i64: 48, 32>}, {pipeline_mode = #tpu.pipeline_mode<synchronous>, transform_indices = @transform_1, window_bounds = array<i64: 32, 128>}, {pipeline_mode = #tpu.pipeline_mode<synchronous>, transform_indices = @transform_2, window_bounds = array<i64: 1, 128>}, {pipeline_mode = #tpu.pipeline_mode<synchronous>, transform_indices = @transform_3, window_bounds = array<i64: 128, 128>}, {pipeline_mode = #tpu.pipeline_mode<synchronous>, transform_indices = @transform_4, window_bounds = array<i64: 1, 128>}, {pipeline_mode = #tpu.pipeline_mode<synchronous>, transform_indices = @transform_5, window_bounds = array<i64: 128, 128>}, {pipeline_mode = #tpu.pipeline_mode<synchronous>, transform_indices = @transform_6, window_bounds = array<i64: 1, 128>}, {pipeline_mode = #tpu.pipeline_mode<synchronous>, transform_indices = @transform_7, window_bounds = array<i64: 128, 32>}, {pipeline_mode = #tpu.pipeline_mode<synchronous>, transform_indices = @transform_8, window_bounds = array<i64: 1, 32>}, {transform_indices = @transform_9, window_bounds = array<i64: 48, 32>}]} {
    %c0 = arith.constant 0 : index
    %c0_0 = arith.constant 0 : index
    %0 = vector.load %arg1[%c0, %c0_0] : memref<48x32xf32, #tpu.memory_space<vmem>>, vector<48x32xf32>
    %1 = arith.truncf %0 : vector<48x32xf32> to vector<48x32xbf16>
    %c0_1 = arith.constant 0 : index
    %c0_2 = arith.constant 0 : index
    %2 = vector.load %arg2[%c0_1, %c0_2] : memref<32x128xbf16, #tpu.memory_space<vmem>>, vector<32x128xbf16>
    %cst = arith.constant dense<0.000000e+00> : vector<48x128xf32>
    %3 = tpu.matmul %1, %2, %cst {dimension_numbers = #tpu.dot_dimension_numbers<[1], [0], [0], [1], [0, 0, 1, 1], [], []>} : vector<48x32xbf16>, vector<32x128xbf16>, vector<48x128xf32> -> vector<48x128xf32>
    %c0_3 = arith.constant 0 : index
    %c0_4 = arith.constant 0 : index
    %4 = vector.load %arg3[%c0_3, %c0_4] : memref<1x128xf32, #tpu.memory_space<vmem>>, vector<1x128xf32>
    %5 = vector.broadcast %4 : vector<1x128xf32> to vector<48x128xf32>
    %6 = arith.addf %3, %5 : vector<48x128xf32>
    %7 = arith.truncf %6 : vector<48x128xf32> to vector<48x128xbf16>
    %8 = math.tanh %7 : vector<48x128xbf16>
    %c0_5 = arith.constant 0 : index
    %c0_6 = arith.constant 0 : index
    %9 = vector.load %arg4[%c0_5, %c0_6] : memref<128x128xbf16, #tpu.memory_space<vmem>>, vector<128x128xbf16>
    %cst_7 = arith.constant dense<0.000000e+00> : vector<48x128xf32>
    %10 = tpu.matmul %8, %9, %cst_7 {dimension_numbers = #tpu.dot_dimension_numbers<[1], [0], [0], [1], [0, 0, 1, 1], [], []>} : vector<48x128xbf16>, vector<128x128xbf16>, vector<48x128xf32> -> vector<48x128xf32>
    %c0_8 = arith.constant 0 : index
    %c0_9 = arith.constant 0 : index
    %11 = vector.load %arg5[%c0_8, %c0_9] : memref<1x128xf32, #tpu.memory_space<vmem>>, vector<1x128xf32>
    %12 = vector.broadcast %11 : vector<1x128xf32> to vector<48x128xf32>
    %13 = arith.addf %10, %12 : vector<48x128xf32>
    %14 = arith.truncf %13 : vector<48x128xf32> to vector<48x128xbf16>
    %15 = math.tanh %14 : vector<48x128xbf16>
    %c0_10 = arith.constant 0 : index
    %c0_11 = arith.constant 0 : index
    %16 = vector.load %arg6[%c0_10, %c0_11] : memref<128x128xbf16, #tpu.memory_space<vmem>>, vector<128x128xbf16>
    %cst_12 = arith.constant dense<0.000000e+00> : vector<48x128xf32>
    %17 = tpu.matmul %15, %16, %cst_12 {dimension_numbers = #tpu.dot_dimension_numbers<[1], [0], [0], [1], [0, 0, 1, 1], [], []>} : vector<48x128xbf16>, vector<128x128xbf16>, vector<48x128xf32> -> vector<48x128xf32>
    %c0_13 = arith.constant 0 : index
    %c0_14 = arith.constant 0 : index
    %18 = vector.load %arg7[%c0_13, %c0_14] : memref<1x128xf32, #tpu.memory_space<vmem>>, vector<1x128xf32>
    %19 = vector.broadcast %18 : vector<1x128xf32> to vector<48x128xf32>
    %20 = arith.addf %17, %19 : vector<48x128xf32>
    %21 = arith.truncf %20 : vector<48x128xf32> to vector<48x128xbf16>
    %22 = math.tanh %21 : vector<48x128xbf16>
    %c0_15 = arith.constant 0 : index
    %c0_16 = arith.constant 0 : index
    %23 = vector.load %arg8[%c0_15, %c0_16] : memref<128x32xbf16, #tpu.memory_space<vmem>>, vector<128x32xbf16>
    %cst_17 = arith.constant dense<0.000000e+00> : vector<48x32xf32>
    %24 = tpu.matmul %22, %23, %cst_17 {dimension_numbers = #tpu.dot_dimension_numbers<[1], [0], [0], [1], [0, 0, 1, 1], [], []>} : vector<48x128xbf16>, vector<128x32xbf16>, vector<48x32xf32> -> vector<48x32xf32>
    %c0_18 = arith.constant 0 : index
    %c0_19 = arith.constant 0 : index
    %25 = vector.load %arg9[%c0_18, %c0_19] : memref<1x32xf32, #tpu.memory_space<vmem>>, vector<1x32xf32>
    %26 = vector.broadcast %25 : vector<1x32xf32> to vector<48x32xf32>
    %27 = arith.addf %24, %26 : vector<48x32xf32>
    %28 = math.tanh %27 : vector<48x32xf32>
    %c0_20 = arith.constant 0 : index
    %c0_21 = arith.constant 0 : index
    %29 = vector.load %arg10[%c0_20, %c0_21] : memref<48x32xf32, #tpu.memory_space<vmem>>, vector<48x32xf32>
    tpu.vector_store %arg10[%c0_20, %c0_21], %28 {strides = array<i32>} : memref<48x32xf32, #tpu.memory_space<vmem>>, vector<48x32xf32>,
    return
  }
  func.func @transform_0(%arg0: i32) -> (i32, i32) {
    %c0_i32 = arith.constant 0 : i32
    %c0_i32_0 = arith.constant 0 : i32
    return %arg0, %c0_i32 : i32, i32
  }
  func.func @transform_1(%arg0: i32) -> (i32, i32) {
    %c0_i32 = arith.constant 0 : i32
    %c0_i32_0 = arith.constant 0 : i32
    %c0_i32_1 = arith.constant 0 : i32
    return %c0_i32, %c0_i32_0 : i32, i32
  }
  func.func @transform_2(%arg0: i32) -> (i32, i32) {
    %c0_i32 = arith.constant 0 : i32
    %c0_i32_0 = arith.constant 0 : i32
    %c0_i32_1 = arith.constant 0 : i32
    return %c0_i32, %c0_i32_0 : i32, i32
  }
  func.func @transform_3(%arg0: i32) -> (i32, i32) {
    %c0_i32 = arith.constant 0 : i32
    %c0_i32_0 = arith.constant 0 : i32
    %c0_i32_1 = arith.constant 0 : i32
    return %c0_i32, %c0_i32_0 : i32, i32
  }
  func.func @transform_4(%arg0: i32) -> (i32, i32) {
    %c0_i32 = arith.constant 0 : i32
    %c0_i32_0 = arith.constant 0 : i32
    %c0_i32_1 = arith.constant 0 : i32
    return %c0_i32, %c0_i32_0 : i32, i32
  }
  func.func @transform_5(%arg0: i32) -> (i32, i32) {
    %c0_i32 = arith.constant 0 : i32
    %c0_i32_0 = arith.constant 0 : i32
    %c0_i32_1 = arith.constant 0 : i32
    return %c0_i32, %c0_i32_0 : i32, i32
  }
  func.func @transform_6(%arg0: i32) -> (i32, i32) {
    %c0_i32 = arith.constant 0 : i32
    %c0_i32_0 = arith.constant 0 : i32
    %c0_i32_1 = arith.constant 0 : i32
    return %c0_i32, %c0_i32_0 : i32, i32
  }
  func.func @transform_7(%arg0: i32) -> (i32, i32) {
    %c0_i32 = arith.constant 0 : i32
    %c0_i32_0 = arith.constant 0 : i32
    %c0_i32_1 = arith.constant 0 : i32
    return %c0_i32, %c0_i32_0 : i32, i32
  }
  func.func @transform_8(%arg0: i32) -> (i32, i32) {
    %c0_i32 = arith.constant 0 : i32
    %c0_i32_0 = arith.constant 0 : i32
    %c0_i32_1 = arith.constant 0 : i32
    return %c0_i32, %c0_i32_0 : i32, i32
  }
  func.func @transform_9(%arg0: i32) -> (i32, i32) {
    %c0_i32 = arith.constant 0 : i32
    %c0_i32_0 = arith.constant 0 : i32
    return %arg0, %c0_i32 : i32, i32
  }
}

</mosaic_0001>

<bundles_post_ra>
// kernel: _forward_impl.1
= control target key start
LH: loop header
LB: loop body
LE: loop exit
PB: predicated region body
PF: predicated region fallthrough
CT: control target
= control target key end

     0   :  { %s1435_s30 = smov 0   ;;  %s1437_s10 = smov 0   ;;  %s1640_s0 = inlined_call_operand.vmem [shape: f32[200,32], index: 0, kind: input, shape index: {}]   ;;  %s1641_s1 = inlined_call_operand.vmem [shape: bf16[32,128], index: 1, kind: input, shape index: {}]   ;;  %s1642_s2 = inlined_call_operand.vmem [shape: f32[1,128], index: 2, kind: input, shape index: {}]   ;;  %s1643_s3 = inlined_call_operand.vmem [shape: bf16[128,128], index: 3, kind: input, shape index: {}]   ;;  %s1644_s4 = inlined_call_operand.vmem [shape: f32[1,128], index: 4, kind: input, shape index: {}]   ;;  %s1645_s5 = inlined_call_operand.vmem [shape: bf16[128,128], index: 5, kind: input, shape index: {}]   ;;  %s1646_s6 = inlined_call_operand.vmem [shape: f32[1,128], index: 6, kind: input, shape index: {}]   ;;  %s1647_s7 = inlined_call_operand.vmem [shape: bf16[128,32], index: 7, kind: input, shape index: {}]   ;;  %s1648_s8 = inlined_call_operand.vmem [shape: f32[1,32], index: 8, kind: input, shape index: {}]   ;;  %s1649_s9 = inlined_call_operand.vmem [shape: f32[200,32], index: 9, kind: output, shape index: {}]  }
   0x1   :  { %s1439_s11 = smov 0  }
   0x2 LB: > { %s1448_s12 = sadd.s32 4294967295, %s1351_s11   ;;  %s1450_s13 = sadd.s32 1, %s1351_s11   ;;  %s1351_s11 = sphi %s1439_s11, %s1656_s11   ;;  %s1347_s10 = sphi %s1437_s10, %s1655_s10   ;;  %s1343_s30 = sphi %s1435_s30, %s1654_s30  }
   0x3   : > { %s217_s14 = ssub.s32 %s1351_s11, %s1450_s13  ;;  %s220_s15 = sadd.s32 1, %s1347_s10 }
   0x4   : > { %p218_p0 = scmp.eq.s32.totalorder %s217_s14, 0  ;;  %p230_p1 = scmp.ne.s32.totalorder %s1347_s10, %s1343_s30 }
   0x5   : > { %p231_p2 = scmp.eq.s32.totalorder %s1448_s12, 4  ;;  %p1001_p3 = scmp.ge.s32.totalorder %s1351_s11, 1 }
   0x6   : > { %s1458_s16 = scalar_select %p218_p0, %s1347_s10, %s220_s15  }
   0x7   : > { %p1460_p4 = por %p231_p2, %p230_p1  ;;  %p296_p5 = scmp.lt.s32.totalorder %s1351_s11, 6 }
   0x9   : > { %p297_p6 = pnand %p1001_p3, %p296_p5 }
   0xa   : > { %s1468_s20 = smul.u32 (!%p297_p6), 6, %s1448_s12  ;;  %s332_s28 = sand.u32 (!%p297_p6), 1, %s1343_s30  }
   0xb   : > { %300 = sbr.rel (%p297_p6) target bundleno = 716 (0x2cc), region = 56 }
   0xc   : > { %p340_p7 = scmp.lt.s32.totalorder (!%p297_p6), %s1468_s20, 24  ;;  %s1149_s29 = smul.u32 (!%p297_p6), 48, %s332_s28 }
   0xe   : > { %s1566_s11 = scalar_lea.vmem (!%p297_p6), [#allocation2], %s1149_s29  }
  0x10   : > { %v1123_v0 = vld [vmem:[%s1641_s1 + $0x8] sm:$0xff]  ;;  %v1122_v1 = vld [vmem:[%s1641_s1] sm:$0xff]  ;;  %s341_s23 = scalar_select %p340_p7, %s1468_s20, 24  ;;  %vm384_vm0 = vcmask 261120   ;;  %v1131_v5 = vld [vmem:[%s1643_s3 + $0x38] sm:$0xff] }
  0x11   : > { %400 = vmatpush.bf16.msra.mxu0 %v1123_v0  ;;  %504 = vmatpush.bf16.msra.mxu1 %v1131_v5  ;;  %v1130_v6 = vld [vmem:[%s1643_s3 + $0x30] sm:$0xff]  ;;  %v1129_v13 = vld [vmem:[%s1643_s3 + $0x28] sm:$0xff]  ;;  %v1128_v14 = vld [vmem:[%s1643_s3 + $0x20] sm:$0xff]  ;;  %s768_s30 = ssub.s32 (%p1460_p4), 25, %s1468_s20  ;;  %s1148_s14 = smul.u32 (%p1460_p4), 48, %s1448_s12 }
  0x12   : > { %s1002_s24 = sshll.u32 %s341_s23, 3  ;;  %v1127_v15 = vld [vmem:[%s1643_s3 + $0x18] sm:$0xff]  ;;  %v1126_v16 = vld [vmem:[%s1643_s3 + $0x10] sm:$0xff]  ;;  %v1125_v17 = vld [vmem:[%s1643_s3 + $0x8] sm:$0xff]  ;;  %p769_p8 = scmp.lt.s32.totalorder (%p1460_p4), %s768_s30, 6 }
  0x13   : > { %s343_s27 = scalar_lea.vmem %s1640_s0, %s1002_s24  ;;  %v1124_v18 = vld [vmem:[%s1643_s3] sm:$0xff]  ;;  %v1139_v34 = vld [vmem:[%s1645_s5 + $0x38] sm:$0xff]  ;;  %v1138_v36 = vld [vmem:[%s1645_s5 + $0x30] sm:$0xff]  ;;  %s1587_s19 = scalar_lea.vmem (%p1460_p4), %s1649_s9, %s1148_s14  }
  0x14   : > { %v355_v2 = vld [vmem:[%s343_s27] sm:$0xff]  ;;  %v356_v3 = vld [vmem:[%s343_s27 + $0x8] sm:$0xff]  ;;  %v357_v7 = vld [vmem:[%s343_s27 + $0x10] sm:$0xff]  ;;  %614 = vmatpush.bf16.msra.mxu2 %v1139_v34 }
  0x15   : > { %401 = vmatpush.bf16.msra.mxu0 %v1122_v1  ;;  %v361_v4 = vpack.c.bf16 %v356_v3, %v355_v2  ;;  %505 = vmatpush.bf16.msra.mxu1 %v1130_v6  ;;  %v358_v8 = vld [vmem:[%s343_s27 + $0x18] sm:$0xff]  ;;  %v359_v10 = vld [vmem:[%s343_s27 + $0x20] sm:$0xff]  ;;  %v360_v11 = vld [vmem:[%s343_s27 + $0x28] sm:$0xff] }
  0x16   : > { %v362_v9 = vpack.c.bf16 %v358_v8, %v357_v7  ;;  %v363_v12 = vpack.c.bf16 %v360_v11, %v359_v10  ;;  %v1239_v20 = vld [vmem:[%s1642_s2] ss:$0 sm:$0xff]  ;;  %v1137_v52 = vld [vmem:[%s1645_s5 + $0x28] sm:$0xff]  ;;  %v1135_v54 = vld [vmem:[%s1645_s5 + $0x18] sm:$0xff] }
  0x17   : > { %v1136_v53 = vld [vmem:[%s1645_s5 + $0x20] sm:$0xff]  ;;  %v1134_v55 = vld [vmem:[%s1645_s5 + $0x10] sm:$0xff]  ;;  %v1133_v56 = vld [vmem:[%s1645_s5 + $0x8] sm:$0xff] }
  0x18   : > { %1011 = vmatmul.msk.bf16.vlgmr.msra.gmra.mxu0 %vm384_vm0, %v361_v4  ;;  %615 = vmatpush.bf16.msra.mxu2 %v1138_v36  ;;  %v1132_v57 = vld [vmem:[%s1645_s5] sm:$0xff]  ;;  %v1146_v11 = vld [vmem:[%s1647_s7 + $0x30] sm:$0xff] }
  0x19   : > { %506 = vmatpush.bf16.msra.mxu1 %v1129_v13  ;;  %v1240_v59 = vld [vmem:[%s1644_s4] ss:$0 sm:$0xff] }
  0x1a   : > { %v1241_v34 = vld [vmem:[%s1646_s6] ss:$0 sm:$0xff] }
  0x1c   : > { %616 = vmatpush.bf16.msra.mxu2 %v1137_v52 }
  0x1d   : > { %507 = vmatpush.bf16.msra.mxu1 %v1128_v14 }
  0x20   : > { %617 = vmatpush.bf16.msra.mxu2 %v1136_v53 }
  0x21   : > { %508 = vmatpush.bf16.msra.mxu1 %v1127_v15 }
  0x24   : > { %618 = vmatpush.bf16.msra.mxu2 %v1135_v54 }
  0x25   : > { %509 = vmatpush.bf16.msra.mxu1 %v1126_v16 }
  0x28   : > { %1012 = vmatmul.msk.bf16.gmra.mxu0 %vm384_vm0, %v362_v9  ;;  %619 = vmatpush.bf16.msra.mxu2 %v1134_v55  ;;  %v1147_v9 = vld [vmem:[%s1647_s7 + $0x38] sm:$0xff] }
  0x29   : > { %510 = vmatpush.bf16.msra.mxu1 %v1125_v17  ;;  %724 = vmatpush.bf16.msra.mxu3 %v1147_v9 }
  0x2c   : > { %620 = vmatpush.bf16.msra.mxu2 %v1133_v56 }
  0x2d   : > { %511 = vmatpush.bf16.msra.mxu1 %v1124_v18  ;;  %725 = vmatpush.bf16.msra.mxu3 %v1146_v11 }
  0x30   : > { %621 = vmatpush.bf16.msra.mxu2 %v1132_v57 }
  0x38   : > { %1013 = vmatmul.msk.bf16.gmra.mxu0 %vm384_vm0, %v363_v12 }
  0x95   : > { %v403_v19 = vpop.f32.mrf.mxu0 }
  0x96   : > { %v404_v22 = vadd.f32 %v1239_v20, %v403_v19 }
  0x9d   : > { %v405_v21 = vpop.f32.mrf.mxu0 }
  0x9e   : > { %v406_v23 = vadd.f32 %v1239_v20, %v405_v21 }
  0xa0   : > { %v418_v24 = vpack.c.bf16 %v406_v23, %v404_v22 }
  0xa2   : > { %v421_v25 = vunpack.c.l.bf16 %v418_v24  ;;  %v422_v26 = vunpack.c.h.bf16 %v418_v24 }
  0xa4   : > { %1243 = vtanh.f32 %v421_v25 }
  0xa5   : > { %1245 = vtanh.f32 %v422_v26  ;;  %v408_v27 = vpop.f32.mrf.mxu0 }
  0xa6   : > { %v409_v32 = vadd.f32 %v1239_v20, %v408_v27  ;;  %v1145_v27 = vld [vmem:[%s1647_s7 + $0x28] sm:$0xff] }
  0xa7   : > { %726 = vmatpush.bf16.msra.mxu3 %v1145_v27 }
  0xaa   : > { %v1244_v28 = vpop.eup %1243 }
  0xab   : > { %v1246_v29 = vpop.eup %1245 }
  0xac   : > { %v433_v30 = vpack.c.bf16 %v1246_v29, %v1244_v28  ;;  %v1144_v28 = vld [vmem:[%s1647_s7 + $0x20] sm:$0xff]  ;;  %v1143_v29 = vld [vmem:[%s1647_s7 + $0x18] sm:$0xff] }
  0xad   : > { %v410_v31 = vpop.f32.mrf.mxu0  ;;  %727 = vmatpush.bf16.msra.mxu3 %v1144_v28 }
  0xae   : > { %v411_v33 = vadd.f32 %v1239_v20, %v410_v31  ;;  %512 = vmatmul.bf16.vlgmr.msra.gmra.mxu1 %v433_v30  ;;  %v1142_v30 = vld [vmem:[%s1647_s7 + $0x10] sm:$0xff]  ;;  %v1141_v31 = vld [vmem:[%s1647_s7 + $0x8] sm:$0xff] }
  0xb0   : > { %v419_v35 = vpack.c.bf16 %v411_v33, %v409_v32  ;;  %v1140_v32 = vld [vmem:[%s1647_s7] sm:$0xff] }
  0xb1   : > { %728 = vmatpush.bf16.msra.mxu3 %v1143_v29 }
  0xb2   : > { %v423_v37 = vunpack.c.l.bf16 %v419_v35  ;;  %v424_v38 = vunpack.c.h.bf16 %v419_v35 }
  0xb4   : > { %1247 = vtanh.f32 %v423_v37 }
  0xb5   : > { %1249 = vtanh.f32 %v424_v38  ;;  %v413_v39 = vpop.f32.mrf.mxu0  ;;  %729 = vmatpush.bf16.msra.mxu3 %v1142_v30 }
  0xb6   : > { %v414_v44 = vadd.f32 %v1239_v20, %v413_v39 }
  0xb9   : > { %730 = vmatpush.bf16.msra.mxu3 %v1141_v31 }
  0xba   : > { %v1248_v40 = vpop.eup %1247 }
  0xbb   : > { %v1250_v41 = vpop.eup %1249 }
  0xbc   : > { %v434_v42 = vpack.c.bf16 %v1250_v41, %v1248_v40 }
  0xbd   : > { %v415_v43 = vpop.f32.mrf.mxu0  ;;  %731 = vmatpush.bf16.msra.mxu3 %v1140_v32 }
  0xbe   : > { %v416_v45 = vadd.f32 %v1239_v20, %v415_v43  ;;  %517 = vmatmul.bf16.gmra.mxu1 %v434_v42 }
  0xc0   : > { %v420_v46 = vpack.c.bf16 %v416_v45, %v414_v44 }
  0xc2   : > { %v425_v47 = vunpack.c.l.bf16 %v420_v46  ;;  %v426_v48 = vunpack.c.h.bf16 %v420_v46 }
  0xc4   : > { %1251 = vtanh.f32 %v425_v47 }
  0xc5   : > { %1253 = vtanh.f32 %v426_v48 }
  0xca   : > { %v1252_v49 = vpop.eup %1251 }
  0xcb   : > { %v1254_v50 = vpop.eup %1253 }
  0xcc   : > { %v435_v51 = vpack.c.bf16 %v1254_v50, %v1252_v49 }
  0xce   : > { %522 = vmatmul.bf16.gmra.mxu1 %v435_v51 }
 0x12b   : > { %v513_v58 = vpop.f32.mrf.mxu1 }
 0x12c   : > { %v514_v61 = vadd.f32 %v1240_v59, %v513_v58 }
 0x133   : > { %v515_v60 = vpop.f32.mrf.mxu1 }
 0x134   : > { %v516_v62 = vadd.f32 %v1240_v59, %v515_v60 }
 0x136   : > { %v528_v63 = vpack.c.bf16 %v516_v62, %v514_v61 }
 0x138   : > { %v531_v0 = vunpack.c.l.bf16 %v528_v63  ;;  %v532_v1 = vunpack.c.h.bf16 %v528_v63 }
 0x13a   : > { %1255 = vtanh.f32 %v531_v0  ;;  %v1242_v0 = vld [vmem:[%s1648_s8] ss:$0 sm:$0xff] }
 0x13b   : > { %1257 = vtanh.f32 %v532_v1  ;;  %v518_v2 = vpop.f32.mrf.mxu1 }
 0x13c   : > { %v519_v7 = vadd.f32 %v1240_v59, %v518_v2 }
 0x140   : > { %v1256_v3 = vpop.eup %1255 }
 0x141   : > { %v1258_v4 = vpop.eup %1257 }
 0x142   : > { %v543_v5 = vpack.c.bf16 %v1258_v4, %v1256_v3 }
 0x143   : > { %v520_v6 = vpop.f32.mrf.mxu1 }
 0x144   : > { %v521_v8 = vadd.f32 %v1240_v59, %v520_v6  ;;  %622 = vmatmul.bf16.vlgmr.msra.gmra.mxu2 %v543_v5 }
 0x146   : > { %v529_v10 = vpack.c.bf16 %v521_v8, %v519_v7 }
 0x148   : > { %v533_v12 = vunpack.c.l.bf16 %v529_v10  ;;  %v534_v13 = vunpack.c.h.bf16 %v529_v10 }
 0x14a   : > { %1259 = vtanh.f32 %v533_v12 }
 0x14b   : > { %1261 = vtanh.f32 %v534_v13  ;;  %v523_v14 = vpop.f32.mrf.mxu1 }
 0x14c   : > { %v524_v19 = vadd.f32 %v1240_v59, %v523_v14 }
 0x150   : > { %v1260_v15 = vpop.eup %1259 }
 0x151   : > { %v1262_v16 = vpop.eup %1261 }
 0x152   : > { %v544_v17 = vpack.c.bf16 %v1262_v16, %v1260_v15 }
 0x153   : > { %v525_v18 = vpop.f32.mrf.mxu1 }
 0x154   : > { %v526_v20 = vadd.f32 %v1240_v59, %v525_v18  ;;  %627 = vmatmul.bf16.gmra.mxu2 %v544_v17 }
 0x156   : > { %v530_v21 = vpack.c.bf16 %v526_v20, %v524_v19 }
 0x158   : > { %v535_v22 = vunpack.c.l.bf16 %v530_v21  ;;  %v536_v23 = vunpack.c.h.bf16 %v530_v21 }
 0x15a   : > { %1263 = vtanh.f32 %v535_v22 }
 0x15b   : > { %1265 = vtanh.f32 %v536_v23 }
 0x160   : > { %v1264_v24 = vpop.eup %1263 }
 0x161   : > { %v1266_v25 = vpop.eup %1265 }
 0x162   : > { %v545_v26 = vpack.c.bf16 %v1266_v25, %v1264_v24 }
 0x164   : > { %632 = vmatmul.bf16.gmra.mxu2 %v545_v26 }
 0x1c7   : > { %v623_v33 = vpop.f32.mrf.mxu2 }
 0x1c8   : > { %v624_v36 = vadd.f32 %v1241_v34, %v623_v33 }
 0x1cf   : > { %v625_v35 = vpop.f32.mrf.mxu2 }
 0x1d0   : > { %v626_v37 = vadd.f32 %v1241_v34, %v625_v35 }
 0x1d2   : > { %v638_v38 = vpack.c.bf16 %v626_v37, %v624_v36 }
 0x1d4   : > { %v641_v39 = vunpack.c.l.bf16 %v638_v38  ;;  %v642_v40 = vunpack.c.h.bf16 %v638_v38 }
 0x1d6   : > { %1267 = vtanh.f32 %v641_v39 }
 0x1d7   : > { %1269 = vtanh.f32 %v642_v40  ;;  %v628_v41 = vpop.f32.mrf.mxu2 }
 0x1d8   : > { %v629_v46 = vadd.f32 %v1241_v34, %v628_v41 }
 0x1dc   : > { %v1268_v42 = vpop.eup %1267 }
 0x1dd   : > { %v1270_v43 = vpop.eup %1269 }
 0x1de   : > { %v653_v44 = vpack.c.bf16 %v1270_v43, %v1268_v42 }
 0x1df   : > { %v630_v45 = vpop.f32.mrf.mxu2 }
 0x1e0   : > { %v631_v47 = vadd.f32 %v1241_v34, %v630_v45  ;;  %732 = vmatmul.bf16.vlgmr.msra.gmra.mxu3 %v653_v44 }
 0x1e2   : > { %v639_v48 = vpack.c.bf16 %v631_v47, %v629_v46 }
 0x1e4   : > { %v643_v49 = vunpack.c.l.bf16 %v639_v48  ;;  %v644_v50 = vunpack.c.h.bf16 %v639_v48 }
 0x1e6   : > { %1271 = vtanh.f32 %v643_v49 }
 0x1e7   : > { %1273 = vtanh.f32 %v644_v50  ;;  %v633_v51 = vpop.f32.mrf.mxu2 }
 0x1e8   : > { %v634_v56 = vadd.f32 %v1241_v34, %v633_v51 }
 0x1ec   : > { %v1272_v52 = vpop.eup %1271 }
 0x1ed   : > { %v1274_v53 = vpop.eup %1273 }
 0x1ee   : > { %v654_v54 = vpack.c.bf16 %v1274_v53, %v1272_v52 }
 0x1ef   : > { %v635_v55 = vpop.f32.mrf.mxu2 }
 0x1f0   : > { %v636_v57 = vadd.f32 %v1241_v34, %v635_v55  ;;  %737 = vmatmul.bf16.gmra.mxu3 %v654_v54 }
 0x1f2   : > { %v640_v58 = vpack.c.bf16 %v636_v57, %v634_v56 }
 0x1f4   : > { %v645_v59 = vunpack.c.l.bf16 %v640_v58  ;;  %v646_v60 = vunpack.c.h.bf16 %v640_v58 }
 0x1f6   : > { %1275 = vtanh.f32 %v645_v59 }
 0x1f7   : > { %1277 = vtanh.f32 %v646_v60 }
 0x1fc   : > { %v1276_v61 = vpop.eup %1275 }
 0x1fd   : > { %v1278_v62 = vpop.eup %1277 }
 0x1fe   : > { %v655_v63 = vpack.c.bf16 %v1278_v62, %v1276_v61 }
 0x200   : > { %742 = vmatmul.bf16.gmra.mxu3 %v655_v63 }
 0x263   : > { %v733_v1 = vpop.f32.mrf.mxu3 }
 0x264   : > { %v734_v2 = vadd.f32 %v1242_v0, %v733_v1 }
 0x266   : > { %1279 = vtanh.f32 %v734_v2 }
 0x26b   : > { %v735_v3 = vpop.f32.mrf.mxu3 }
 0x26c   : > { %v1280_v4 = vpop.eup %1279  ;;  %v736_v5 = vadd.f32 %v1242_v0, %v735_v3 }
 0x26d   : > { %754 = vst.msk [vmem:[%s1566_s11] sm:$0xff] %vm384_vm0, %v1280_v4 }
 0x26e   : > { %1281 = vtanh.f32 %v736_v5 }
 0x273   : > { %v738_v6 = vpop.f32.mrf.mxu3 }
 0x274   : > { %v1282_v7 = vpop.eup %1281  ;;  %v739_v8 = vadd.f32 %v1242_v0, %v738_v6 }
 0x275   : > { %755 = vst.msk [vmem:[%s1566_s11 + $0x8] sm:$0xff] %vm384_vm0, %v1282_v7 }
 0x276   : > { %1283 = vtanh.f32 %v739_v8 }
 0x27b   : > { %v740_v9 = vpop.f32.mrf.mxu3 }
 0x27c   : > { %v1284_v10 = vpop.eup %1283  ;;  %v741_v11 = vadd.f32 %v1242_v0, %v740_v9 }
 0x27d   : > { %756 = vst.msk [vmem:[%s1566_s11 + $0x10] sm:$0xff] %vm384_vm0, %v1284_v10 }
 0x27e   : > { %1285 = vtanh.f32 %v741_v11 }
 0x283   : > { %v743_v12 = vpop.f32.mrf.mxu3 }
 0x284   : > { %v1286_v13 = vpop.eup %1285  ;;  %v744_v14 = vadd.f32 %v1242_v0, %v743_v12 }
 0x285   : > { %757 = vst.msk [vmem:[%s1566_s11 + $0x18] sm:$0xff] %vm384_vm0, %v1286_v13 }
 0x286   : > { %1287 = vtanh.f32 %v744_v14 }
 0x28b   : > { %v745_v15 = vpop.f32.mrf.mxu3 }
 0x28c   : > { %v1288_v16 = vpop.eup %1287  ;;  %v746_v17 = vadd.f32 %v1242_v0, %v745_v15 }
 0x28d   : > { %758 = vst.msk [vmem:[%s1566_s11 + $0x20] sm:$0xff] %vm384_vm0, %v1288_v16 }
 0x28e   : > { %1289 = vtanh.f32 %v746_v17 }
 0x291   : > { %766 = sbr.rel (!%p1460_p4) target bundleno = 716 (0x2cc), region = 60 }
 0x294   : > { %v1290_v18 = vpop.eup %1289 }
 0x295   : > { %759 = vst.msk [vmem:[%s1566_s11 + $0x28] sm:$0xff] %vm384_vm0, %v1290_v18 }
 0x296   : > { %s1658_s30 = smov (!%p769_p8, %s768_s30), 6 }
 0x297   : > { %s1110_s21 = sshll.u32 %s1658_s30, 3 }
 0x298   : > { %p1113_p9 = scmp.eq.s32.totalorder %s1110_s21, 0 }
 0x299   : > { %1291 = sdivrem.u32 (!%p1113_p9), %s1658_s30, 6 }
 0x29a   : > { %777 = sbr.rel (%p1113_p9) target bundleno = 716 (0x2cc), region = 64 }
 0x2a2   : > { %s1593_s17 = spop.drf %1291 }
 0x2a3   : > { %s1293_s22 = spop.drf %1291  ;;  %p1114_p10 = scmp.le.s32.totalorder %s1593_s17, 0 }
 0x2a4   : > { %s1651_s12 = smov (!%p1114_p10), %s1587_s19  ;;  %s1652_s20 = smov (!%p1114_p10), %s1566_s11 }
 0x2a5   : > { %954 = sbr.rel (%p1114_p10) target bundleno = 690 (0x2b2), region = 140  ;;  %s1602_s23 = smov (!%p1114_p10), 0  }
 0x2a6   : > { %s1604_s24 = smov (!%p1114_p10), 0  }
 0x2aa LB: >> { %v852_v19 = vld [vmem:[%s1359_s20] sm:$0xff]  ;;  %v854_v20 = vld [vmem:[%s1359_s20 + $0x8] sm:$0xff]  ;;  %v856_v21 = vld [vmem:[%s1359_s20 + $0x10] sm:$0xff]  ;;  %s864_s25 = sadd.s32 1, %s1363_s23  ;;  %s846_s24 = sadd.s32 1, %s1367_s24   ;;  %s1367_s24 = sphi %s1604_s24, %s846_s24   ;;  %s1363_s23 = sphi %s1602_s23, %s1653_s23   ;;  %s1359_s20 = sphi %s1652_s20, %s869_s20   ;;  %s1355_s12 = sphi %s1651_s12, %s870_s12  }
 0x2ab   : >> { %853 = vst [vmem:[%s1355_s12] sm:$0xff] %v852_v19  ;;  %v858_v22 = vld [vmem:[%s1359_s20 + $0x18] sm:$0xff]  ;;  %p865_p11 = scmp.ge.s32.totalorder %s864_s25, %s1593_s17  ;;  %v860_v23 = vld [vmem:[%s1359_s20 + $0x20] sm:$0xff]  ;;  %v862_v24 = vld [vmem:[%s1359_s20 + $0x28] sm:$0xff]  ;;  %p845_p12 = scmp.ge.s32.totalorder %s846_s24, %s1593_s17 }
 0x2ac   : >> { %855 = vst [vmem:[%s1355_s12 + $0x8] sm:$0xff] %v854_v20 }
 0x2ad   : >> { %857 = vst [vmem:[%s1355_s12 + $0x10] sm:$0xff] %v856_v21  ;;  %s1660_s25 = smov (%p865_p11, %s864_s25), 0  ;;  %848 = sbr.rel (!%p845_p12) target bundleno = 682 (0x2aa), region = 146 }
 0x2ae   : >> { %859 = vst [vmem:[%s1355_s12 + $0x18] sm:$0xff] %v858_v22  ;;  %s867_s26 = smul.u32 48, %s1660_s25  ;;  %s1653_s23 = smov %s1660_s25 }
 0x2af   : >> { %861 = vst [vmem:[%s1355_s12 + $0x20] sm:$0xff] %v860_v23 }
 0x2b0   : >> { %863 = vst [vmem:[%s1355_s12 + $0x28] sm:$0xff] %v862_v24  ;;  %s869_s20 = scalar_lea.vmem %s1566_s11, %s867_s26 [#allocation2]   ;;  %s870_s12 = scalar_lea.vmem %s1587_s19, %s867_s26  }
 0x2b2 PF: > { %1294 = sdivrem.u32 %s1658_s30, 6 }
 0x2b3   : > { %s1115_s27 = smul.u32 48, %s1593_s17 }
 0x2b5   : > { %s1625_s28 = scalar_lea.vmem %s1566_s11, %s1115_s27 [#allocation2]   ;;  %s877_s29 = scalar_lea.vmem %s1587_s19, %s1115_s27  }
 0x2bb   : > { %s1295_s14 = spop.drf %1294 }
 0x2bc   : > { %s1296_s15 = spop.drf %1294 }
 0x2bd   : > { %p1117_p13 = scmp.le.s32.totalorder %s1296_s15, 0 }
 0x2be   : > { %s1369_s18 = smov (!%p1117_p13), %s877_s29   ;;  %s1373_s21 = smov (!%p1117_p13), %s1625_s28  }
 0x2bf   : > { %968 = sbr.rel (%p1117_p13) target bundleno = 716 (0x2cc), region = 151  ;;  %s1377_s22 = smov (!%p1117_p13), 0  }
 0x2c0   : > { %s1381_s24 = smov (!%p1117_p13), 0  }
 0x2c4 LB: >> { %v887_v25 = vld [vmem:[%s1375_s21] sm:$0xff]  ;;  %s889_s11 = sadd.s32 1, %s1379_s22  ;;  %s881_s24 = sadd.s32 1, %s1383_s24   ;;  %s1383_s24 = sphi %s1381_s24, %s881_s24   ;;  %s1379_s22 = sphi %s1377_s22, %s1378_s22   ;;  %s1375_s21 = sphi %s1373_s21, %s894_s21   ;;  %s1371_s18 = sphi %s1369_s18, %s895_s18  }
 0x2c5   : >> { %888 = vst [vmem:[%s1371_s18] sm:$0xff] %v887_v25  ;;  %p890_p0 = scmp.ge.s32.totalorder %s889_s11, %s1296_s15  ;;  %p880_p1 = scmp.ge.s32.totalorder %s881_s24, %s1296_s15 }
 0x2c7   : >> { %s1662_s11 = smov (%p890_p0, %s889_s11), 0  ;;  %883 = sbr.rel (!%p880_p1) target bundleno = 708 (0x2c4), region = 157 }
 0x2c8   : >> { %s1118_s30 = sshll.u32 %s1662_s11, 3  ;;  %s1378_s22 = smov %s1662_s11  }
 0x2c9   : >> { %s894_s21 = scalar_lea.vmem %s1625_s28, %s1118_s30 [#allocation2]   ;;  %s895_s18 = scalar_lea.vmem %s877_s29, %s1118_s30  }
 0x2cc PF: > { %p16_p2 = scmp.ge.s32.totalorder %s1450_s13, 7   ;;  %s1654_s30 = smov %s1347_s10 }
 0x2cd   : > { %s1655_s10 = smov %s1458_s16  ;;  %s1656_s11 = smov %s1450_s13 }
 0x2ce   :  { %18 = sbr.rel (!%p16_p2) target bundleno = 2 (0x2), region = 168 }

</bundles_post_ra>
